<compile_context>
chip_gen: v6e
topology: v6e:2x2x1
jax: 0.10.0
libtpu: 0.0.40
codegen_flags: <defaults>
</compile_context>

<pallas_src>
import jax
import jax.numpy as jnp
from jax.experimental import pallas as pl
from jax.experimental.pallas import tpu as pltpu


def _round_hidden(hidden_dim: int, multiple_of: int) -> int:
    hidden_dim = int(2 * hidden_dim / 3)
    return multiple_of * ((hidden_dim + multiple_of - 1) // multiple_of)


def _round_up(x: int, m: int) -> int:
    return ((x + m - 1) // m) * m


def _vmem_capacity_and_budget():
    """(capacity, usable budget) in bytes; conservative fallback = 64 MiB."""
    cap = 0
    try:
        info = pltpu.get_tpu_info()
        cap = int(getattr(info, "vmem_capacity_bytes", 0) or 0)
    except Exception:
        cap = 0
    if cap <= 0:
        cap = 64 * 1024 * 1024  # v7x per-TensorCore size (smallest generation)
    # Leave headroom for Mosaic internal scratch / output double-buffering.
    budget = min(cap - 8 * 1024 * 1024, int(cap * 0.85))
    return cap, budget


def _pick_hidden_tile(hidden: int, th_max: int) -> int:
    """Largest divisor of `hidden` that is a multiple of 128 and <= th_max.

    Falls back to the full hidden dim only when no such divisor exists (tiny
    toy configs where hidden is not a multiple of 128)."""
    if hidden <= th_max:
        return hidden
    for d in range(th_max - th_max % 128, 127, -128):
        if hidden % d == 0:
            return d
    return hidden


def _pick_m_tile(dim: int, th: int, bx: int, bw: int, bo: int,
                 acc_bytes_per_row: int, budget: int) -> int:
    """Largest M tile whose double-buffered blocks (+ accumulator) fit VMEM."""
    weight_bytes = 2 * (3 * dim * th * bw)              # w1, w3, w2 blocks x2
    per_row = 2 * dim * bx + 2 * dim * bo + acc_bytes_per_row
    for tm in (1024, 768, 512, 384, 256, 192, 128, 64, 32, 16):
        if weight_bytes + tm * per_row <= budget:
            return tm
    return 16


def _ffn_kernel_out_acc(x_ref, w1_ref, w3_ref, w2_ref, o_ref):
    """f32 output: accumulate the hidden reduction directly in the output
    block (block index constant over the hidden axis -> VMEM resident)."""
    h = pl.program_id(1)
    x = x_ref[...]
    h1 = jnp.dot(x, w1_ref[...], preferred_element_type=jnp.float32)
    h3 = jnp.dot(x, w3_ref[...], preferred_element_type=jnp.float32)
    g = (h1 * jax.nn.sigmoid(h1)) * h3                  # SwiGLU gate in f32
    partial = jnp.dot(g.astype(x.dtype), w2_ref[...],
                      preferred_element_type=jnp.float32)

    @pl.when(h == 0)
    def _():
        o_ref[...] = partial

    @pl.when(h > 0)
    def _():
        o_ref[...] += partial


def _ffn_kernel_scratch_acc(x_ref, w1_ref, w3_ref, w2_ref, o_ref, acc_ref):
    """Narrow (e.g. bf16) output: accumulate in f32 VMEM scratch, cast once."""
    h = pl.program_id(1)

    @pl.when(h == 0)
    def _():
        acc_ref[...] = jnp.zeros_like(acc_ref)

    x = x_ref[...]
    h1 = jnp.dot(x, w1_ref[...], preferred_element_type=jnp.float32)
    h3 = jnp.dot(x, w3_ref[...], preferred_element_type=jnp.float32)
    g = (h1 * jax.nn.sigmoid(h1)) * h3
    acc_ref[...] += jnp.dot(g.astype(x.dtype), w2_ref[...],
                            preferred_element_type=jnp.float32)

    @pl.when(h == pl.num_programs(1) - 1)
    def _():
        o_ref[...] = acc_ref[...].astype(o_ref.dtype)


def feed_forward(x, w1, w2, w3, *, compute_dtype=None):
    """SwiGLU FFN forward: w2(silu(w1(x)) * w3(x)).

    x:  [B, T, dim]
    w1: [hidden, dim]   (PyTorch nn.Linear weight layout)
    w2: [dim, hidden]
    w3: [hidden, dim]
    compute_dtype: optional operand dtype (recommend jnp.bfloat16 for large
      shapes); accumulation stays f32 regardless.
    """
    B, T, dim = x.shape
    hidden = w1.shape[0]
    assert w1.shape == (hidden, dim)
    assert w3.shape == (hidden, dim)
    assert w2.shape == (dim, hidden)

    orig_dtype = x.dtype
    if compute_dtype is not None:
        x = x.astype(compute_dtype)
        w1 = w1.astype(compute_dtype)
        w2 = w2.astype(compute_dtype)
        w3 = w3.astype(compute_dtype)

    # One-time transposes to natural [K, N] MXU-feed layouts.
    w1t = w1.T                      # (dim, hidden)
    w3t = w3.T                      # (dim, hidden)
    w2t = w2.T                      # (hidden, dim)

    out_dtype = x.dtype
    bx = jnp.dtype(x.dtype).itemsize
    bw = jnp.dtype(w1t.dtype).itemsize
    bo = jnp.dtype(out_dtype).itemsize
    use_out_acc = jnp.dtype(out_dtype) == jnp.dtype(jnp.float32)
    acc_bytes_per_row = 0 if use_out_acc else dim * 4

    cap, budget = _vmem_capacity_and_budget()
    th_max = 256 if cap <= 72 * 1024 * 1024 else 512     # v7x vs v5e/v6e
    th_eff = _pick_hidden_tile(hidden, th_max)
    tm_pick = _pick_m_tile(dim, th_eff, bx, bw, bo, acc_bytes_per_row, budget)

    M = B * T
    # Equalize M blocks (bounds padding waste to <16 rows per block).
    n_m_blocks = max(1, pl.cdiv(M, tm_pick))
    tm_eff = _round_up(pl.cdiv(M, n_m_blocks), 16)
    # Keep both v7x TensorCores busy when M fits a single (large) tile.
    if n_m_blocks == 1 and M >= 256:
        n_m_blocks = 2
        tm_eff = _round_up(pl.cdiv(M, 2), 16)
    M_pad = n_m_blocks * tm_eff

    x2d = x.reshape(M, dim)
    if M_pad != M:
        x2d = jnp.pad(x2d, ((0, M_pad - M), (0, 0)))

    n_h_blocks = hidden // th_eff
    grid = (n_m_blocks, n_h_blocks)

    # Cost estimate (weights are re-fetched once per M tile).
    cost = pl.CostEstimate(
        flops=6 * M_pad * dim * hidden,
        transcendentals=M_pad * hidden,
        bytes_accessed=(M_pad * dim * bx + M_pad * dim * bo
                        + n_m_blocks * 3 * hidden * dim * bw))

    in_specs = [
        pl.BlockSpec((tm_eff, dim), lambda i, h: (i, 0)),    # x
        pl.BlockSpec((dim, th_eff), lambda i, h: (0, h)),    # w1.T
        pl.BlockSpec((dim, th_eff), lambda i, h: (0, h)),    # w3.T
        pl.BlockSpec((th_eff, dim), lambda i, h: (h, 0)),    # w2.T
    ]
    out_spec = pl.BlockSpec((tm_eff, dim), lambda i, h: (i, 0))

    kernel = _ffn_kernel_out_acc if use_out_acc else _ffn_kernel_scratch_acc
    scratch = [] if use_out_acc else [pltpu.VMEM((tm_eff, dim), jnp.float32)]

    out2d = pl.pallas_call(
        kernel,
        out_shape=jax.ShapeDtypeStruct((M_pad, dim), out_dtype),
        grid_spec=pltpu.PrefetchScalarGridSpec(
            num_scalar_prefetch=0,
            grid=grid,
            in_specs=in_specs,
            out_specs=out_spec,
            scratch_shapes=scratch,
        ),
        compiler_params=pltpu.CompilerParams(
            dimension_semantics=("parallel", "arbitrary"),
            vmem_limit_bytes=int(budget)),
        cost_estimate=cost,
    )(x2d, w1t, w3t, w2t)

    out2d = out2d[:M]
    return out2d.reshape(B, T, dim).astype(orig_dtype)


def feed_forward_ref(x, w1, w2, w3):
    h1 = jnp.einsum("btd,hd->bth", x, w1)
    h3 = jnp.einsum("btd,hd->bth", x, w3)
    h = (h1 * jax.nn.sigmoid(h1)) * h3
    return jnp.einsum("bth,dh->btd", h, w2)


if __name__ == "__main__":
    # Module config (small): dim=32, hidden_dim=64, multiple_of=32, dropout=0.0
    dim = 32
    hidden_dim_arg = 64
    multiple_of = 32
    hidden = _round_hidden(hidden_dim_arg, multiple_of)   # -> 64

    B, T = 2, 8

    key = jax.random.PRNGKey(0)
    kx, k1, k2, k3 = jax.random.split(key, 4)

    x = jax.random.normal(kx, (B, T, dim), dtype=jnp.float32)
    # Deterministic "kaiming-uniform-ish" init in PyTorch nn.Linear layout.
    bound1 = 1.0 / (dim ** 0.5)
    bound2 = 1.0 / (hidden ** 0.5)
    w1 = jax.random.uniform(k1, (hidden, dim), jnp.float32, -bound1, bound1)
    w3 = jax.random.uniform(k3, (hidden, dim), jnp.float32, -bound1, bound1)
    w2 = jax.random.uniform(k2, (dim, hidden), jnp.float32, -bound2, bound2)

    out = feed_forward(x, w1, w2, w3)
    out = jax.block_until_ready(out)

    ref = feed_forward_ref(x, w1, w2, w3)
    assert out.shape == (B, T, dim)
    assert jnp.allclose(out, ref, atol=1e-4, rtol=1e-4), "mismatch vs reference"

    print("KERNEL_OK")
</pallas_src>

<mosaic_0001>
module attributes {stable_mosaic.version = 11 : i64} {
  func.func @_ffn_kernel_out_acc(%arg0: i32, %arg1: i32, %arg2: memref<16x32xf32, #tpu.memory_space<vmem>>, %arg3: memref<32x64xf32, #tpu.memory_space<vmem>>, %arg4: memref<32x64xf32, #tpu.memory_space<vmem>>, %arg5: memref<64x32xf32, #tpu.memory_space<vmem>>, %arg6: memref<16x32xf32, #tpu.memory_space<vmem>>) attributes {dimension_semantics = [#tpu.dimension_semantics<parallel>, #tpu.dimension_semantics<arbitrary>], iteration_bounds = array<i64: 1, 1>, scalar_prefetch = 0 : i64, scratch_operands = 0 : i64, tpu.core_type = #tpu.core_type<tc>, window_params = [{transform_indices = @transform_0, window_bounds = array<i64: 16, 32>}, {transform_indices = @transform_1, window_bounds = array<i64: 32, 64>}, {transform_indices = @transform_2, window_bounds = array<i64: 32, 64>}, {transform_indices = @transform_3, window_bounds = array<i64: 64, 32>}, {transform_indices = @transform_4, window_bounds = array<i64: 16, 32>}]} {
    %c0 = arith.constant 0 : index
    %c0_0 = arith.constant 0 : index
    %0 = vector.load %arg2[%c0, %c0_0] : memref<16x32xf32, #tpu.memory_space<vmem>>, vector<16x32xf32>
    %c0_1 = arith.constant 0 : index
    %c0_2 = arith.constant 0 : index
    %1 = vector.load %arg3[%c0_1, %c0_2] : memref<32x64xf32, #tpu.memory_space<vmem>>, vector<32x64xf32>
    %cst = arith.constant dense<0.000000e+00> : vector<16x64xf32>
    %2 = tpu.matmul %0, %1, %cst {dimension_numbers = #tpu.dot_dimension_numbers<[1], [0], [0], [1], [0, 0, 1, 1], [], []>} : vector<16x32xf32>, vector<32x64xf32>, vector<16x64xf32> -> vector<16x64xf32>
    %c0_3 = arith.constant 0 : index
    %c0_4 = arith.constant 0 : index
    %3 = vector.load %arg4[%c0_3, %c0_4] : memref<32x64xf32, #tpu.memory_space<vmem>>, vector<32x64xf32>
    %cst_5 = arith.constant dense<0.000000e+00> : vector<16x64xf32>
    %4 = tpu.matmul %0, %3, %cst_5 {dimension_numbers = #tpu.dot_dimension_numbers<[1], [0], [0], [1], [0, 0, 1, 1], [], []>} : vector<16x32xf32>, vector<32x64xf32>, vector<16x64xf32> -> vector<16x64xf32>
    %5 = arith.negf %2 : vector<16x64xf32>
    %6 = math.exp %5 : vector<16x64xf32>
    %cst_6 = arith.constant 1.000000e+00 : f32
    %7 = vector.broadcast %cst_6 : f32 to vector<16x64xf32>
    %8 = arith.addf %7, %6 : vector<16x64xf32>
    %9 = arith.divf %7, %8 : vector<16x64xf32>
    %10 = arith.mulf %2, %9 : vector<16x64xf32>
    %11 = arith.mulf %10, %4 : vector<16x64xf32>
    %c0_7 = arith.constant 0 : index
    %c0_8 = arith.constant 0 : index
    %12 = vector.load %arg5[%c0_7, %c0_8] : memref<64x32xf32, #tpu.memory_space<vmem>>, vector<64x32xf32>
    %cst_9 = arith.constant dense<0.000000e+00> : vector<16x32xf32>
    %13 = tpu.matmul %11, %12, %cst_9 {dimension_numbers = #tpu.dot_dimension_numbers<[1], [0], [0], [1], [0, 0, 1, 1], [], []>} : vector<16x64xf32>, vector<64x32xf32>, vector<16x32xf32> -> vector<16x32xf32>
    %c0_i32 = arith.constant 0 : i32
    %14 = arith.cmpi eq, %arg1, %c0_i32 : i32
    %15 = arith.extui %14 : i1 to i32
    %c0_i32_10 = arith.constant 0 : i32
    %16 = arith.cmpi ne, %15, %c0_i32_10 : i32
    scf.if %16 {
      %c0_13 = arith.constant 0 : index
      %c0_14 = arith.constant 0 : index
      %20 = vector.load %arg6[%c0_13, %c0_14] : memref<16x32xf32, #tpu.memory_space<vmem>>, vector<16x32xf32>
      tpu.vector_store %arg6[%c0_13, %c0_14], %13 {strides = array<i32>} : memref<16x32xf32, #tpu.memory_space<vmem>>, vector<16x32xf32>,
    } else {
    }
    %c0_i32_11 = arith.constant 0 : i32
    %17 = arith.cmpi sgt, %arg1, %c0_i32_11 : i32
    %18 = arith.extui %17 : i1 to i32
    %c0_i32_12 = arith.constant 0 : i32
    %19 = arith.cmpi ne, %18, %c0_i32_12 : i32
    scf.if %19 {
      %c0_13 = arith.constant 0 : index
      %c0_14 = arith.constant 0 : index
      %20 = vector.load %arg6[%c0_13, %c0_14] : memref<16x32xf32, #tpu.memory_space<vmem>>, vector<16x32xf32>
      %21 = arith.addf %20, %13 : vector<16x32xf32>
      %c0_15 = arith.constant 0 : index
      %c0_16 = arith.constant 0 : index
      %22 = vector.load %arg6[%c0_15, %c0_16] : memref<16x32xf32, #tpu.memory_space<vmem>>, vector<16x32xf32>
      tpu.vector_store %arg6[%c0_15, %c0_16], %21 {strides = array<i32>} : memref<16x32xf32, #tpu.memory_space<vmem>>, vector<16x32xf32>,
    } else {
    }
    return
  }
  func.func @transform_0(%arg0: i32, %arg1: i32) -> (i32, i32) {
    %c0_i32 = arith.constant 0 : i32
    %c0_i32_0 = arith.constant 0 : i32
    return %arg0, %c0_i32 : i32, i32
  }
  func.func @transform_1(%arg0: i32, %arg1: i32) -> (i32, i32) {
    %c0_i32 = arith.constant 0 : i32
    %c0_i32_0 = arith.constant 0 : i32
    return %c0_i32, %arg1 : i32, i32
  }
  func.func @transform_2(%arg0: i32, %arg1: i32) -> (i32, i32) {
    %c0_i32 = arith.constant 0 : i32
    %c0_i32_0 = arith.constant 0 : i32
    return %c0_i32, %arg1 : i32, i32
  }
  func.func @transform_3(%arg0: i32, %arg1: i32) -> (i32, i32) {
    %c0_i32 = arith.constant 0 : i32
    %c0_i32_0 = arith.constant 0 : i32
    return %arg1, %c0_i32 : i32, i32
  }
  func.func @transform_4(%arg0: i32, %arg1: i32) -> (i32, i32) {
    %c0_i32 = arith.constant 0 : i32
    %c0_i32_0 = arith.constant 0 : i32
    return %arg0, %c0_i32 : i32, i32
  }
}

</mosaic_0001>

<bundles_post_ra>
// kernel: tpu_custom_call.1
= control target key start
LH: loop header
LB: loop body
LE: loop exit
PB: predicated region body
PF: predicated region fallthrough
CT: control target
= control target key end

     0   :  { %vm24_vm0 = vcmask 261120   ;;  %s518_s0 = inlined_call_operand.vmem [shape: f32[16,32], index: 0, kind: input, shape index: {}]   ;;  %s519_s1 = inlined_call_operand.vmem [shape: f32[32,64], index: 1, kind: input, shape index: {}]   ;;  %s520_s2 = inlined_call_operand.vmem [shape: f32[32,64], index: 2, kind: input, shape index: {}]   ;;  %s521_s3 = inlined_call_operand.vmem [shape: f32[64,32], index: 3, kind: input, shape index: {}]   ;;  %s522_s4 = inlined_call_operand.hbm [shape: f32[16,32], index: 4, kind: output, shape index: {}]  }
   0x1   :  { %v23_v0 = vld [vmem:[%s519_s1 + $0x18] sm:$0xff]  ;;  %v22_v1 = vld [vmem:[%s519_s1 + $0x10] sm:$0xff]  ;;  %v18_v2 = vld [vmem:[%s518_s0] sm:$0xff] }
   0x2   :  { %353 = vmatprep.subr.mxu1 %v23_v0  ;;  %v21_v3 = vld [vmem:[%s519_s1 + $0x8] sm:$0xff]  ;;  %361 = vmatprep.mubr.msk.f32.mxu1 %vm24_vm0, %v18_v2 }
   0x3   :  { %354 = vmatpush3.msra.mxu1 %v23_v0 }
   0x4   :  { %355 = vmatprep.subr.mxu1 %v22_v1 }
   0x5   :  { %9 = vsyncpa [#allocation3], 0  ;;  %356 = vmatpush3.msra.mxu1 %v22_v1  ;;  %v20_v4 = vld [vmem:[%s519_s1] sm:$0xff]  ;;  %v19_v5 = vld [vmem:[%s518_s0 + $0x8] sm:$0xff]  ;;  %vm209_vm1 = vcmask 523264  }
   0x6   :  { %357 = vmatprep.subr.mxu1 %v21_v3  ;;  %v109_v6 = vld [vmem:[%s520_s2 + $0x18] sm:$0xff]  ;;  %v108_v7 = vld [vmem:[%s520_s2 + $0x10] sm:$0xff]  ;;  %v107_v8 = vld [vmem:[%s520_s2 + $0x8] sm:$0xff] }
   0x7   :  { %358 = vmatpush3.msra.mxu1 %v21_v3  ;;  %v106_v9 = vld [vmem:[%s520_s2] sm:$0xff]  ;;  %v208_v10 = vld [vmem:[%s521_s3 + $0x38] sm:$0xff]  ;;  %v207_v11 = vld [vmem:[%s521_s3 + $0x30] sm:$0xff] }
   0x8   :  { %359 = vmatprep.subr.mxu1 %v20_v4  ;;  %375 = vmatprep.subr.mxu0 %v208_v10  ;;  %v206_v12 = vld [vmem:[%s521_s3 + $0x28] sm:$0xff]  ;;  %v205_v13 = vld [vmem:[%s521_s3 + $0x20] sm:$0xff]  ;;  %v204_v14 = vld [vmem:[%s521_s3 + $0x18] sm:$0xff] }
   0x9   :  { %360 = vmatpush3.msra.mxu1 %v20_v4  ;;  %376 = vmatpush3.msra.mxu0 %v208_v10  ;;  %v203_v15 = vld [vmem:[%s521_s3 + $0x10] sm:$0xff]  ;;  %v202_v16 = vld [vmem:[%s521_s3 + $0x8] sm:$0xff]  ;;  %v201_v17 = vld [vmem:[%s521_s3] sm:$0xff]  ;;  %s427_s3 = smov [#allocation2]  }
   0xa   :  { %362 = vmatmul.mubr.msk.f32.vlgmr.msra.gmra.mxu1 %vm24_vm0, %v19_v5  ;;  %364 = vmatprep.subr.mxu1 %v109_v6  ;;  %s312_s22 = sshll.u32 %s427_s3, 4  ;;  %s313_s22 = int_to_ptr.vmem [resolvable:$true] %s312_s22 }
   0xb   :  { %365 = vmatpush3.msra.mxu1 %v109_v6  ;;  %372 = vmatprep.mubr.msk.f32.mxu1 %vm24_vm0, %v18_v2  ;;  %s405_s23 = scalar_lea.vmem %s313_s22, 256  ;;  %p410_p1 = scmp.lt.s32.totalorder %s313_s22, %s313_s22 }
   0xc   :  { %366 = vmatprep.subr.mxu1 %v108_v7  ;;  %377 = vmatprep.subr.mxu0 %v207_v11  ;;  %p406_p0 = scmp.ne.s32.totalorder %s313_s22, %s405_s23  ;;  %p411_p2 = scmp.lt.s32.totalorder %s405_s23, %s405_s23 }
   0xd   :  { %367 = vmatpush3.msra.mxu1 %v108_v7  ;;  %378 = vmatpush3.msra.mxu0 %v207_v11 }
   0xe   :  { %368 = vmatprep.subr.mxu1 %v107_v8  ;;  %379 = vmatprep.subr.mxu0 %v206_v12  ;;  %p412_p3 = por %p411_p2, %p410_p1 }
   0xf   :  { %369 = vmatpush3.msra.mxu1 %v107_v8  ;;  %380 = vmatpush3.msra.mxu0 %v206_v12 }
  0x10   :  { %370 = vmatprep.subr.mxu1 %v106_v9  ;;  %381 = vmatprep.subr.mxu0 %v205_v13  ;;  %p413_p4 = pnand %p412_p3, %p406_p0 }
  0x11   :  { %371 = vmatpush3.msra.mxu1 %v106_v9  ;;  %382 = vmatpush3.msra.mxu0 %v205_v13 }
  0x12   :  { %373 = vmatmul.mubr.msk.f32.vlgmr.msra.gmra.mxu1 %vm24_vm0, %v19_v5  ;;  %383 = vmatprep.subr.mxu0 %v204_v14 }
  0x13   :  { %384 = vmatpush3.msra.mxu0 %v204_v14 }
  0x14   :  { %385 = vmatprep.subr.mxu0 %v203_v15 }
  0x15   :  { %386 = vmatpush3.msra.mxu0 %v203_v15 }
  0x16   :  { %387 = vmatprep.subr.mxu0 %v202_v16 }
  0x17   :  { %388 = vmatpush3.msra.mxu0 %v202_v16 }
  0x18   :  { %389 = vmatprep.subr.mxu0 %v201_v17 }
  0x19   :  { %390 = vmatpush3.msra.mxu0 %v201_v17 }
  0xca   :  { %v363_v18 = vpop.f32.mrf.mxu1 }
  0xcb   :  { %v328_v19 = vmul.f32 -1.442695, %v363_v18 }
  0xcc   :  { %v97_v20 = vpop.f32.mrf.mxu1 }
  0xcd   :  { %397 = vpow2.f32 %v328_v19  ;;  %v327_v21 = vmul.f32 -1.442695, %v97_v20 }
  0xcf   :  { %399 = vpow2.f32 %v327_v21 }
  0xd2   :  { %v374_v27 = vpop.f32.mrf.mxu1 }
  0xd4   :  { %v176_v31 = vpop.f32.mrf.mxu1 }
  0xda   :  { %v398_v22 = vpop.eup %397 }
  0xdb   :  { %v192_v23 = vadd.f32 1.0, %v398_v22 }
  0xdc   :  { %v400_v24 = vpop.eup %399 }
  0xdd   :  { %401 = vrcp.f32 %v192_v23  ;;  %v191_v25 = vadd.f32 1.0, %v400_v24 }
  0xdf   :  { %403 = vrcp.f32 %v191_v25 }
  0xea   :  { %v402_v26 = vpop.eup %401 }
  0xeb   :  { %v198_v29 = vmul.f32 %v402_v26, %v363_v18 }
  0xec   :  { %v404_v28 = vpop.eup %403 }
  0xed   :  { %v197_v30 = vmul.f32 %v404_v28, %v97_v20  ;;  %v200_v33 = vmul.f32 %v374_v27, %v198_v29 }
  0xef   :  { %v199_v32 = vmul.f32 %v197_v30, %v176_v31 }
  0xf1   :  { %391 = vmatprep.mubr.msk.f32.mxu0 %vm209_vm1, %v199_v32 }
  0xf2   :  { %392 = vmatmul.mubr.msk.f32.vlgmr.msra.gmra.mxu0 %vm209_vm1, %v200_v33 }
 0x1b2   :  { %v393_v34 = vpop.f32.mrf.mxu0 }
 0x1b3   :  { %296 = vst.msk [vmem:[#allocation2 + $0x8] sm:$0xff] %vm24_vm0, %v393_v34 }
 0x1b4   :  { %v282_v35 = vpop.f32.mrf.mxu0 }
 0x1b5   :  { %295 = vst.msk [vmem:[#allocation2] sm:$0xff] %vm24_vm0, %v282_v35 }
 0x1b6   :  { %416 = shalt.err (!%p413_p4)
}
 0x1b7   :  { %s428_s24 = smov 128   ;;  %s429_s25 = smov 8  }
 0x1b8   :  { %318 = dma.vmem_to_hbm [thread:$0]  %s313_s22, 256, %s522_s4, [#allocation3], %s428_s24, %s428_s24, %s429_s25  }
 0x1b9   :  { %425 = dma.done.wait [#allocation3], 256  }
 0x1ba   :  { %426 = vsyncadd [#allocation3], 4294967040 }
 0x1bb   :  { %322 = vsyncpa [#allocation3], 1 }

</bundles_post_ra>
